<compile_context>
chip_gen: v6e
topology: v6e:2x2x1
jax: 0.10.0
libtpu: 0.0.40
codegen_flags: <defaults>
</compile_context>

<pallas_src>
import jax
import jax.numpy as jnp
from jax.experimental import pallas as pl
from jax.experimental.pallas import tpu as pltpu


LANES = 256                       # lane-dense last dim (2 full vregs wide)
TARGET_TILE_BYTES = 4 * 1024 * 1024   # ~4 MiB per buffer -> 16 MiB double-buffered


def _gamma_kernel(param_ref, x_ref, o_ref):
    # param_ref: SMEM f32[3] = [gamma_exponent, gain, zero_fill]
    g = param_ref[0]
    gain = param_ref[1]
    zero_fill = param_ref[2]
    x = x_ref[...].astype(jnp.float32)          # in-kernel upcast (free under mem-bound)
    # x ** g via EUP exp/log (HBM-bandwidth bound on v5e/v6e; near EUP-bound on v7x).
    y = gain * jnp.exp(g * jnp.log(x))
    # Guard x == 0: exp(g*log(0)) is NaN when g == 0 (torch: 0**0 == 1) and already 0
    # for g > 0. zero_fill is precomputed in the wrapper (gain if g == 0 else 0).
    y = jnp.where(x == 0.0, zero_fill, y)
    o_ref[...] = jnp.clip(y, 0.0, 1.0).astype(o_ref.dtype)


def adjust_gamma_pallas(img, gamma_exponent, gain=1.0, *,
                        max_tile_bytes=TARGET_TILE_BYTES):
    """Elementwise gamma distortion of a float image in [0, 1] (any shape).

    Float-only (matches torchvision's float adjust_gamma path). Exponents are
    expected in [0, 1] (the GammaDistortion module's range); negative exponents
    with x == 0 would diverge from torch (documented, unreachable from the module).
    """
    orig_shape = img.shape
    orig_dtype = img.dtype
    itemsize = jnp.dtype(orig_dtype).itemsize

    flat = img.reshape(-1)                       # row-major flatten: no data movement
    total = flat.shape[0]

    # 2D lane-dense view: rows x LANES. Only pad (at most LANES-1 elements) when the
    # element count is not a LANES multiple; no padding to a tile multiple.
    rows = pl.cdiv(total, LANES)
    padded_total = rows * LANES
    ragged = padded_total != total
    if ragged:
        # Pad with ones: 1 ** g == 1 for any g, keeps the pad region finite.
        flat = jnp.pad(flat, (0, padded_total - total), constant_values=1.0)
    x2d = flat.reshape(rows, LANES)

    # Tile size: biggest block <= max_tile_bytes, sublane-aligned for the dtype.
    sublane = {4: 8, 2: 16, 1: 32}.get(itemsize, 8)
    max_rows = max(sublane, (max_tile_bytes // (LANES * itemsize)) // sublane * sublane)
    if rows <= max_rows:
        tile_rows = rows                         # single full-array block
        num_tiles = 1
    else:
        tile_rows = max_rows
        num_tiles = pl.cdiv(rows, tile_rows)     # trailing partial block masked by Pallas

    g = jnp.asarray(gamma_exponent, dtype=jnp.float32)
    gain_f = jnp.asarray(gain, dtype=jnp.float32)
    zero_fill = jnp.where(g == 0.0, gain_f, jnp.float32(0.0))
    params = jnp.stack([g, gain_f, zero_fill])

    cost = pl.CostEstimate(
        flops=3 * total,
        transcendentals=2 * total,
        bytes_accessed=2 * total * itemsize,
    )

    out2d = pl.pallas_call(
        _gamma_kernel,
        out_shape=jax.ShapeDtypeStruct((rows, LANES), orig_dtype),
        grid_spec=pltpu.PrefetchScalarGridSpec(
            num_scalar_prefetch=1,
            grid=(num_tiles,),
            in_specs=[pl.BlockSpec((tile_rows, LANES), lambda i, p: (i, 0))],
            out_specs=pl.BlockSpec((tile_rows, LANES), lambda i, p: (i, 0)),
        ),
        compiler_params=pltpu.CompilerParams(
            dimension_semantics=("parallel",),        # megacore sharding on v7x
            vmem_limit_bytes=32 * 1024 * 1024,        # lifts v5e's 16 MiB scoped default
        ),
        cost_estimate=cost,
    )(params, x2d)

    out = out2d.reshape(-1)
    if ragged:
        out = out[:total]
    return out.reshape(orig_shape)


class GammaDistortion:
    """JAX/Pallas port of the PyTorch GammaDistortion module."""

    def __init__(self, gamma=0.0):
        gamma = min(gamma, 1.0)
        self.range = (1.0 - gamma, gamma)

    def forward(self, img, key):
        lo, hi = self.range
        # TODO(synk): Python's random.uniform global-state draw is replaced by an
        # explicit jax.random key (works even when lo > hi, the default gamma=0 case).
        u = jax.random.uniform(key, (), dtype=jnp.float32)
        parameter = lo + u * (hi - lo)
        return adjust_gamma_pallas(img, parameter, gain=1.0)


if __name__ == "__main__":
    key = jax.random.PRNGKey(0)
    k_img, k_param, k_img2, k_img3 = jax.random.split(key, 4)

    # --- Test 1: small NCHW batch in [0, 1], LANES-divisible shape -----------
    img = jax.random.uniform(k_img, (2, 4, 16, 16), dtype=jnp.float32)
    module = GammaDistortion(gamma=0.7)  # parameter ~ Uniform(0.3, 0.7)
    out = jax.block_until_ready(module.forward(img, k_param))

    lo, hi = module.range
    u = jax.random.uniform(k_param, (), dtype=jnp.float32)
    param = lo + u * (hi - lo)
    ref = jnp.clip(jnp.power(img, param), 0.0, 1.0)
    assert out.shape == img.shape and out.dtype == img.dtype
    assert jnp.max(jnp.abs(out - ref)) < 1e-5

    # --- Test 2: awkward shape (exercises the tiny ragged pad + slice-back) --
    img2 = jax.random.uniform(k_img2, (1, 3, 7, 9), dtype=jnp.float32)
    out2 = jax.block_until_ready(adjust_gamma_pallas(img2, param))
    ref2 = jnp.clip(jnp.power(img2, param), 0.0, 1.0)
    assert out2.shape == img2.shape
    assert jnp.max(jnp.abs(out2 - ref2)) < 1e-5

    # --- Test 3: x == 0 with exponent == 0 (NaN guard; torch gives 1) --------
    img3 = img2.at[0, 0, 0, 0].set(0.0)
    out3 = jax.block_until_ready(adjust_gamma_pallas(img3, 0.0))
    assert jnp.all(jnp.isfinite(out3))
    assert abs(float(out3[0, 0, 0, 0]) - 1.0) < 1e-6
    assert jnp.max(jnp.abs(out3 - 1.0)) < 1e-5   # x**0 == 1 everywhere

    # --- Test 4: bf16 input (in-kernel cast path, native-dtype HBM I/O) ------
    img4 = jax.random.uniform(k_img3, (2, 4, 16, 16),
                              dtype=jnp.float32).astype(jnp.bfloat16)
    out4 = jax.block_until_ready(adjust_gamma_pallas(img4, param))
    ref4 = jnp.clip(jnp.power(img4.astype(jnp.float32), param), 0.0, 1.0)
    assert out4.dtype == jnp.bfloat16
    assert jnp.max(jnp.abs(out4.astype(jnp.float32) - ref4)) < 2e-2

    # --- Test 5: multi-tile grid with a partial trailing block ----------------
    img5 = jax.random.uniform(k_img, (1, 3, 40, 40), dtype=jnp.float32)
    out5 = jax.block_until_ready(
        adjust_gamma_pallas(img5, param, max_tile_bytes=8 * 1024))
    ref5 = jnp.clip(jnp.power(img5, param), 0.0, 1.0)
    assert out5.shape == img5.shape
    assert jnp.max(jnp.abs(out5 - ref5)) < 1e-5

    print("KERNEL_OK")
</pallas_src>

<mosaic_0001>
module attributes {stable_mosaic.version = 11 : i64} {
  func.func @_gamma_kernel(%arg0: i32, %arg1: memref<3xf32, #tpu.memory_space<smem>>, %arg2: memref<8x256xf32, #tpu.memory_space<vmem>>, %arg3: memref<8x256xf32, #tpu.memory_space<vmem>>) attributes {dimension_semantics = [#tpu.dimension_semantics<parallel>], iteration_bounds = array<i64: 1>, scalar_prefetch = 1 : i64, scratch_operands = 0 : i64, tpu.core_type = #tpu.core_type<tc>, window_params = [{transform_indices = @transform_0, window_bounds = array<i64: 8, 256>}, {transform_indices = @transform_1, window_bounds = array<i64: 8, 256>}]} {
    %c0 = arith.constant 0 : index
    %0 = memref.load %arg1[%c0] : memref<3xf32, #tpu.memory_space<smem>>
    %c1 = arith.constant 1 : index
    %1 = memref.load %arg1[%c1] : memref<3xf32, #tpu.memory_space<smem>>
    %c2 = arith.constant 2 : index
    %2 = memref.load %arg1[%c2] : memref<3xf32, #tpu.memory_space<smem>>
    %c0_0 = arith.constant 0 : index
    %c0_1 = arith.constant 0 : index
    %3 = vector.load %arg2[%c0_0, %c0_1] : memref<8x256xf32, #tpu.memory_space<vmem>>, vector<8x256xf32>
    %4 = math.log %3 : vector<8x256xf32>
    %5 = vector.broadcast %0 : f32 to vector<8x256xf32>
    %6 = arith.mulf %5, %4 : vector<8x256xf32>
    %7 = math.exp %6 : vector<8x256xf32>
    %8 = vector.broadcast %1 : f32 to vector<8x256xf32>
    %9 = arith.mulf %8, %7 : vector<8x256xf32>
    %cst = arith.constant 0.000000e+00 : f32
    %10 = vector.broadcast %cst : f32 to vector<8x256xf32>
    %11 = arith.cmpf oeq, %3, %10 : vector<8x256xf32>
    %12 = vector.broadcast %2 : f32 to vector<8x256xf32>
    %13 = arith.select %11, %12, %9 : vector<8x256xi1>, vector<8x256xf32>
    %cst_2 = arith.constant 0.000000e+00 : f32
    %cst_3 = arith.constant 1.000000e+00 : f32
    %14 = vector.broadcast %cst_2 : f32 to vector<8x256xf32>
    %15 = arith.maximumf %14, %13 : vector<8x256xf32>
    %16 = vector.broadcast %cst_3 : f32 to vector<8x256xf32>
    %17 = arith.minimumf %16, %15 : vector<8x256xf32>
    %c0_4 = arith.constant 0 : index
    %c0_5 = arith.constant 0 : index
    %18 = vector.load %arg3[%c0_4, %c0_5] : memref<8x256xf32, #tpu.memory_space<vmem>>, vector<8x256xf32>
    tpu.vector_store %arg3[%c0_4, %c0_5], %17 {strides = array<i32>} : memref<8x256xf32, #tpu.memory_space<vmem>>, vector<8x256xf32>,
    return
  }
  func.func @transform_0(%arg0: i32, %arg1: memref<3xf32, #tpu.memory_space<smem>>) -> (i32, i32) {
    %c0_i32 = arith.constant 0 : i32
    %c0_i32_0 = arith.constant 0 : i32
    return %arg0, %c0_i32 : i32, i32
  }
  func.func @transform_1(%arg0: i32, %arg1: memref<3xf32, #tpu.memory_space<smem>>) -> (i32, i32) {
    %c0_i32 = arith.constant 0 : i32
    %c0_i32_0 = arith.constant 0 : i32
    return %arg0, %c0_i32 : i32, i32
  }
}

</mosaic_0001>

<bundles_post_ra>
// kernel: tpu_custom_call.1
= control target key start
LH: loop header
LB: loop body
LE: loop exit
PB: predicated region body
PF: predicated region fallthrough
CT: control target
= control target key end

     0   :  { %s138_s9 = smov [#allocation3]   ;;  %s165_s0 = inlined_call_operand.hbm [shape: f32[3], index: 0, kind: input, shape index: {}]   ;;  %s166_s1 = inlined_call_operand.hbm [shape: f32[8,256], index: 1, kind: input, shape index: {}]   ;;  %s167_s2 = inlined_call_operand.hbm [shape: f32[8,256], index: 2, kind: output, shape index: {}]  }
   0x1   :  { %8 = dma.hbm_to_smem %s165_s0, 16, %s138_s9, [#allocation2] }
   0x2   :  { %132 = dma.done.wait [#allocation2], 16 }
   0x3   :  { %133 = vsyncadd [#allocation2], 4294967280 }
   0x4   :  { %10 = sfence }
   0x5   :  { %11 = vsyncpa [#allocation5], 0 }
   0x6   :  { %12 = vsyncpa [#allocation6], 0  ;;  %s139_s12 = smov [#allocation4]  }
   0x7   :  { %s19_s13 = sshll.u32 %s139_s12, 4  ;;  %s20_s13 = int_to_ptr.vmem [resolvable:$true] %s19_s13 }
   0x8   :  { %s100_s14 = scalar_lea.vmem %s20_s13, 256  ;;  %p105_p1 = scmp.lt.s32.totalorder %s20_s13, %s20_s13 }
   0x9   :  { %p101_p0 = scmp.ne.s32.totalorder %s20_s13, %s100_s14  ;;  %p106_p2 = scmp.lt.s32.totalorder %s100_s14, %s100_s14 }
   0xb   :  { %p107_p3 = por %p106_p2, %p105_p1 }
   0xd   :  { %p108_p4 = pnand %p107_p3, %p101_p0 }
   0xf   :  { %111 = shalt.err (!%p108_p4)
}
  0x10   :  { %22 = dma.hbm_to_vmem [thread:$0]  %s166_s1, 256, %s20_s13, [#allocation5]  }
  0x11   :  { %134 = dma.done.wait [#allocation5], 256  }
  0x12   :  { %135 = vsyncadd [#allocation5], 4294967040  ;;  %v29_v0 = vld [vmem:[#allocation4] sm:$0xff]  ;;  %v30_v1 = vld [vmem:[#allocation4 + $0x8] sm:$0xff]  ;;  %s26_s0 = sld [smem:[#allocation3]]  ;;  %s140_s18 = smov [#allocation7]  }
  0x13   :  { %76 = vlog2.f32 %v29_v0  ;;  %s71_s17 = sld [smem:[#allocation3 + $0x1]]  ;;  %vm45_vm0 = vcmp.eq.f32.partialorder %v29_v0, 0.0  ;;  %vm46_vm1 = vcmp.eq.f32.partialorder %v30_v1, 0.0  ;;  %s62_s19 = sshll.u32 %s140_s18, 4  ;;  %s63_s19 = int_to_ptr.vmem [resolvable:$true] %s62_s19 }
  0x14   :  { %78 = vlog2.f32 %v30_v1  ;;  %s72_s1 = sld [smem:[#allocation3 + $0x2]]  ;;  %s112_s20 = scalar_lea.vmem %s63_s19, 256 }
  0x15   :  { %p113_p5 = scmp.ne.s32.totalorder %s63_s19, %s112_s20  ;;  %p117_p6 = scmp.lt.s32.totalorder %s63_s19, %s63_s19 }
  0x16   :  { %p118_p7 = scmp.lt.s32.totalorder %s112_s20, %s112_s20 }
  0x18   :  { %v35_v3 = vstv %s26_s0  ;;  %p119_p8 = por %p118_p7, %p117_p6 }
  0x19   :  { %v42_v11 = vstv %s71_s17 }
  0x1a   :  { %v47_v13 = vstv %s72_s1  ;;  %p120_p9 = pnand %p119_p8, %p113_p5 }
  0x20   :  { %v77_v2 = vpop.eup %76 }
  0x21   :  { %v79_v4 = vpop.eup %78  ;;  %v32_v5 = vmul.f32 0.6931472, %v77_v2 }
  0x22   :  { %v34_v6 = vmul.f32 0.6931472, %v79_v4 }
  0x23   :  { %v36_v7 = vmul.f32 %v35_v3, %v32_v5 }
  0x24   :  { %v37_v8 = vmul.f32 %v35_v3, %v34_v6 }
  0x25   :  { %v38_v9 = vmul.f32 1.442695, %v36_v7 }
  0x26   :  { %v40_v10 = vmul.f32 1.442695, %v37_v8 }
  0x27   :  { %80 = vpow2.f32 %v38_v9 }
  0x28   :  { %82 = vpow2.f32 %v40_v10 }
  0x34   :  { %v81_v12 = vpop.eup %80 }
  0x35   :  { %v83_v14 = vpop.eup %82  ;;  %v43_v15 = vmul.f32 %v81_v12, %v42_v11 }
  0x36   :  { %v44_v16 = vmul.f32 %v83_v14, %v42_v11 }
  0x37   :  { %v48_v17 = vsel %vm45_vm0, %v47_v13, %v43_v15 }
  0x38   :  { %v50_v18 = vmax.f32 %v48_v17, 0.0  ;;  %v49_v19 = vsel %vm46_vm1, %v47_v13, %v44_v16 }
  0x39   :  { %v51_v20 = vmax.f32 %v49_v19, 0.0 }
  0x3a   :  { %v52_v21 = vmin.f32 %v50_v18, 1.0 }
  0x3b   :  { %v53_v22 = vmin.f32 %v51_v20, 1.0 }
  0x3c   :  { %54 = vst [vmem:[#allocation7] sm:$0xff] %v52_v21 }
  0x3d   :  { %55 = vst [vmem:[#allocation7 + $0x8] sm:$0xff] %v53_v22 }
  0x3e   :  { %123 = shalt.err (!%p120_p9)
}
  0x3f   :  { %65 = dma.vmem_to_hbm [thread:$0]  %s63_s19, 256, %s167_s2, [#allocation6]  }
  0x40   :  { %136 = dma.done.wait [#allocation6], 256  }
  0x41   :  { %137 = vsyncadd [#allocation6], 4294967040 }
  0x42   :  { %69 = vsyncpa [#allocation5], 1 }
  0x43   :  { %70 = vsyncpa [#allocation6], 1 }

</bundles_post_ra>
